<compile_context>
chip_gen: v7x
topology: tpu7x:2x2x1
jax: 0.10.0
libtpu: 0.0.40
codegen_flags: <defaults>
</compile_context>

<pallas_src>
import jax
import jax.numpy as jnp
from jax.experimental import pallas as pl
from jax.experimental.pallas import tpu as pltpu

NUM_CLASSES = 5
IN_FEATURES = 150    # fc2 input
HID_FEATURES = 50    # fc2 output / fc3 input

DEFAULT_TILE_BATCH = 512   # rows per grid step; multiple of 16 (bf16 sublane rule)
MIN_PALLAS_BATCH = 64      # below this, pallas launch overhead dominates -> plain jnp


def _round_up(n, m):
    return ((n + m - 1) // m) * m


def _mlp_kernel(x_ref, w2_ref, b2_ref, w3_ref, b3_ref, o_ref):
    # fc2: bf16 x @ bf16 W2 -> f32 accumulate on the MXU; bias + ReLU in f32 on VPU.
    h = jnp.dot(x_ref[...], w2_ref[...], preferred_element_type=jnp.float32)
    h = jnp.maximum(h + b2_ref[...], 0.0)
    # fc3: tiny (50 -> 5) matmul kept in f32 (negligible cost).
    out = jnp.dot(h, w3_ref[...], preferred_element_type=jnp.float32) + b3_ref[...]
    o_ref[...] = out.astype(o_ref.dtype)


def _jnp_forward(x, w2, b2, w3, b3):
    """Plain-JAX path with the same numerics as the kernel (bf16 fc2, f32 fc3)."""
    h = jnp.dot(x.astype(jnp.bfloat16), w2.astype(jnp.bfloat16),
                preferred_element_type=jnp.float32)
    h = jnp.maximum(h + b2, 0.0)
    return jnp.dot(h, w3.astype(jnp.float32),
                   preferred_element_type=jnp.float32) + b3


def mlp_forward(x, w2, b2, w3, b3, *, tile_batch=DEFAULT_TILE_BATCH):
    batch = x.shape[0]
    b2 = b2.astype(jnp.float32).reshape(1, HID_FEATURES)
    b3 = b3.astype(jnp.float32).reshape(1, NUM_CLASSES)

    # Tiny batches: the kernel would be pure fixed overhead -> plain jnp.
    if batch < MIN_PALLAS_BATCH:
        return _jnp_forward(x, w2, b2, w3, b3)

    # bf16 for the big HBM stream (x) and the matching weight; f32 elsewhere.
    x_bf = x.astype(jnp.bfloat16)
    w2_bf = w2.astype(jnp.bfloat16)
    w3_f = w3.astype(jnp.float32)

    # Tile the batch; TB multiple of 16 (bf16 sublane packing). Pad batch to a
    # tile multiple so every grid step sees a full block (padded rows discarded).
    tb = min(tile_batch, _round_up(batch, 16))
    padded_batch = _round_up(batch, tb)
    pad_rows = padded_batch - batch
    if pad_rows:
        x_bf = jnp.pad(x_bf, ((0, pad_rows), (0, 0)))
    grid = (padded_batch // tb,)

    def const_spec(shape):
        return pl.BlockSpec(shape, lambda i: tuple(0 for _ in shape))

    cost = pl.CostEstimate(
        flops=2 * padded_batch * (IN_FEATURES * HID_FEATURES
                                  + HID_FEATURES * NUM_CLASSES),
        transcendentals=0,
        bytes_accessed=(padded_batch * IN_FEATURES * 2          # x (bf16)
                        + padded_batch * NUM_CLASSES * 4        # out (f32)
                        + IN_FEATURES * HID_FEATURES * 2        # W2 (bf16)
                        + HID_FEATURES * NUM_CLASSES * 4        # W3 (f32)
                        + (HID_FEATURES + NUM_CLASSES) * 4),    # biases
    )

    out = pl.pallas_call(
        _mlp_kernel,
        out_shape=jax.ShapeDtypeStruct((padded_batch, NUM_CLASSES), jnp.float32),
        grid=grid,
        in_specs=[
            pl.BlockSpec((tb, IN_FEATURES), lambda i: (i, 0)),   # x: tiled over batch
            const_spec(w2_bf.shape),                             # weights stay resident
            const_spec(b2.shape),
            const_spec(w3_f.shape),
            const_spec(b3.shape),
        ],
        out_specs=pl.BlockSpec((tb, NUM_CLASSES), lambda i: (i, 0)),
        compiler_params=pltpu.CompilerParams(
            dimension_semantics=("parallel",)),                  # megacore on v7x
        cost_estimate=cost,
    )(x_bf, w2_bf, b2, w3_f, b3)

    return out[:batch] if pad_rows else out


def init_params(key):
    """Deterministic init mimicking nn.Linear default: U(-1/sqrt(fan_in), 1/sqrt(fan_in))."""
    k2w, k2b, k3w, k3b = jax.random.split(key, 4)
    bound2 = 1.0 / jnp.sqrt(IN_FEATURES)
    bound3 = 1.0 / jnp.sqrt(HID_FEATURES)
    # Stored transposed: (in_features, out_features)
    w2 = jax.random.uniform(k2w, (IN_FEATURES, HID_FEATURES), jnp.float32, -bound2, bound2)
    b2 = jax.random.uniform(k2b, (1, HID_FEATURES), jnp.float32, -bound2, bound2)
    w3 = jax.random.uniform(k3w, (HID_FEATURES, NUM_CLASSES), jnp.float32, -bound3, bound3)
    b3 = jax.random.uniform(k3b, (1, NUM_CLASSES), jnp.float32, -bound3, bound3)
    # NOTE: fc1 (534 -> 150) exists in __init__ but is unused in forward, so it is omitted.
    return w2, b2, w3, b3


def reference_forward_bf16(x, w2, b2, w3, b3):
    """Same math as the kernel (bf16 fc2 inputs, f32 accumulate)."""
    h = jnp.dot(x.astype(jnp.bfloat16), w2.astype(jnp.bfloat16),
                preferred_element_type=jnp.float32)
    h = jnp.maximum(h + b2, 0.0)
    return jnp.dot(h, w3, preferred_element_type=jnp.float32) + b3


def reference_forward_f32(x, w2, b2, w3, b3):
    h = jnp.maximum(x @ w2 + b2, 0.0)
    return h @ w3 + b3


if __name__ == "__main__":
    key = jax.random.PRNGKey(0)
    kx, kp = jax.random.split(key)
    w2, b2, w3, b3 = init_params(kp)

    # Pallas path: multi-step grid + ragged-batch padding (2000 -> 4 tiles of 512).
    batch = 2000
    x = jax.random.normal(kx, (batch, IN_FEATURES), jnp.float32)

    out = mlp_forward(x, w2, b2, w3, b3)
    out = jax.block_until_ready(out)
    assert out.shape == (batch, NUM_CLASSES)

    ref_bf16 = reference_forward_bf16(x, w2, b2, w3, b3)
    ref_f32 = reference_forward_f32(x, w2, b2, w3, b3)
    assert jnp.allclose(out, ref_bf16, atol=1e-4, rtol=1e-4), "mismatch vs bf16 reference"
    assert jnp.allclose(out, ref_f32, atol=3e-2, rtol=3e-2), "mismatch vs f32 reference"

    # Tiny-batch path (plain jnp fallback; Pallas overhead not worth it at batch=8).
    x_small = jax.random.normal(kx, (8, IN_FEATURES), jnp.float32)
    out_small = jax.block_until_ready(mlp_forward(x_small, w2, b2, w3, b3))
    assert out_small.shape == (8, NUM_CLASSES)
    assert jnp.allclose(out_small, reference_forward_f32(x_small, w2, b2, w3, b3),
                        atol=3e-2, rtol=3e-2)

    print("KERNEL_OK")
</pallas_src>

<mosaic_0001>
module attributes {stable_mosaic.version = 11 : i64} {
  func.func @_mlp_kernel(%arg0: i32, %arg1: memref<512x150xbf16, #tpu.memory_space<vmem>>, %arg2: memref<150x50xbf16, #tpu.memory_space<vmem>>, %arg3: memref<1x50xf32, #tpu.memory_space<vmem>>, %arg4: memref<50x5xf32, #tpu.memory_space<vmem>>, %arg5: memref<1x5xf32, #tpu.memory_space<vmem>>, %arg6: memref<512x5xf32, #tpu.memory_space<vmem>>) attributes {dimension_semantics = [#tpu.dimension_semantics<parallel>], iteration_bounds = array<i64: 4>, scalar_prefetch = 0 : i64, scratch_operands = 0 : i64, tpu.core_type = #tpu.core_type<tc>, window_params = [{transform_indices = @transform_0, window_bounds = array<i64: 512, 150>}, {pipeline_mode = #tpu.pipeline_mode<synchronous>, transform_indices = @transform_1, window_bounds = array<i64: 150, 50>}, {pipeline_mode = #tpu.pipeline_mode<synchronous>, transform_indices = @transform_2, window_bounds = array<i64: 1, 50>}, {pipeline_mode = #tpu.pipeline_mode<synchronous>, transform_indices = @transform_3, window_bounds = array<i64: 50, 5>}, {pipeline_mode = #tpu.pipeline_mode<synchronous>, transform_indices = @transform_4, window_bounds = array<i64: 1, 5>}, {transform_indices = @transform_5, window_bounds = array<i64: 512, 5>}]} {
    %c0 = arith.constant 0 : index
    %c0_0 = arith.constant 0 : index
    %0 = vector.load %arg1[%c0, %c0_0] : memref<512x150xbf16, #tpu.memory_space<vmem>>, vector<512x150xbf16>
    %c0_1 = arith.constant 0 : index
    %c0_2 = arith.constant 0 : index
    %1 = vector.load %arg2[%c0_1, %c0_2] : memref<150x50xbf16, #tpu.memory_space<vmem>>, vector<150x50xbf16>
    %cst = arith.constant dense<0.000000e+00> : vector<512x50xf32>
    %2 = tpu.matmul %0, %1, %cst {dimension_numbers = #tpu.dot_dimension_numbers<[1], [0], [0], [1], [0, 0, 1, 1], [], []>} : vector<512x150xbf16>, vector<150x50xbf16>, vector<512x50xf32> -> vector<512x50xf32>
    %c0_3 = arith.constant 0 : index
    %c0_4 = arith.constant 0 : index
    %3 = vector.load %arg3[%c0_3, %c0_4] : memref<1x50xf32, #tpu.memory_space<vmem>>, vector<1x50xf32>
    %4 = vector.broadcast %3 : vector<1x50xf32> to vector<512x50xf32>
    %5 = arith.addf %2, %4 : vector<512x50xf32>
    %cst_5 = arith.constant 0.000000e+00 : f32
    %6 = vector.broadcast %cst_5 : f32 to vector<512x50xf32>
    %7 = arith.maximumf %5, %6 : vector<512x50xf32>
    %c0_6 = arith.constant 0 : index
    %c0_7 = arith.constant 0 : index
    %8 = vector.load %arg4[%c0_6, %c0_7] : memref<50x5xf32, #tpu.memory_space<vmem>>, vector<50x5xf32>
    %cst_8 = arith.constant dense<0.000000e+00> : vector<512x5xf32>
    %9 = tpu.matmul %7, %8, %cst_8 {dimension_numbers = #tpu.dot_dimension_numbers<[1], [0], [0], [1], [0, 0, 1, 1], [], []>} : vector<512x50xf32>, vector<50x5xf32>, vector<512x5xf32> -> vector<512x5xf32>
    %c0_9 = arith.constant 0 : index
    %c0_10 = arith.constant 0 : index
    %10 = vector.load %arg5[%c0_9, %c0_10] : memref<1x5xf32, #tpu.memory_space<vmem>>, vector<1x5xf32>
    %11 = vector.broadcast %10 : vector<1x5xf32> to vector<512x5xf32>
    %12 = arith.addf %9, %11 : vector<512x5xf32>
    %c0_11 = arith.constant 0 : index
    %c0_12 = arith.constant 0 : index
    %13 = vector.load %arg6[%c0_11, %c0_12] : memref<512x5xf32, #tpu.memory_space<vmem>>, vector<512x5xf32>
    tpu.vector_store %arg6[%c0_11, %c0_12], %12 {strides = array<i32>} : memref<512x5xf32, #tpu.memory_space<vmem>>, vector<512x5xf32>,
    return
  }
  func.func @transform_0(%arg0: i32) -> (i32, i32) {
    %c0_i32 = arith.constant 0 : i32
    %c0_i32_0 = arith.constant 0 : i32
    return %arg0, %c0_i32 : i32, i32
  }
  func.func @transform_1(%arg0: i32) -> (i32, i32) {
    %c0_i32 = arith.constant 0 : i32
    %c0_i32_0 = arith.constant 0 : i32
    %c0_i32_1 = arith.constant 0 : i32
    return %c0_i32, %c0_i32_0 : i32, i32
  }
  func.func @transform_2(%arg0: i32) -> (i32, i32) {
    %c0_i32 = arith.constant 0 : i32
    %c0_i32_0 = arith.constant 0 : i32
    %c0_i32_1 = arith.constant 0 : i32
    return %c0_i32, %c0_i32_0 : i32, i32
  }
  func.func @transform_3(%arg0: i32) -> (i32, i32) {
    %c0_i32 = arith.constant 0 : i32
    %c0_i32_0 = arith.constant 0 : i32
    %c0_i32_1 = arith.constant 0 : i32
    return %c0_i32, %c0_i32_0 : i32, i32
  }
  func.func @transform_4(%arg0: i32) -> (i32, i32) {
    %c0_i32 = arith.constant 0 : i32
    %c0_i32_0 = arith.constant 0 : i32
    %c0_i32_1 = arith.constant 0 : i32
    return %c0_i32, %c0_i32_0 : i32, i32
  }
  func.func @transform_5(%arg0: i32) -> (i32, i32) {
    %c0_i32 = arith.constant 0 : i32
    %c0_i32_0 = arith.constant 0 : i32
    return %arg0, %c0_i32 : i32, i32
  }
}

</mosaic_0001>

<bundles_post_ra>
// kernel: tpu_custom_call.1
= control target key start
LH: loop header
LB: loop body
LE: loop exit
PB: predicated region body
PF: predicated region fallthrough
CT: control target
= control target key end

     0   :  { %s2391_s18 = smov 0   ;;  %s2944_s0 = inlined_call_operand.vmem [shape: bf16[2048,150], index: 0, kind: input, shape index: {}]   ;;  %s2945_s1 = inlined_call_operand.vmem [shape: bf16[150,50], index: 1, kind: input, shape index: {}]   ;;  %s2946_s2 = inlined_call_operand.vmem [shape: f32[1,50], index: 2, kind: input, shape index: {}]   ;;  %s2947_s3 = inlined_call_operand.vmem [shape: f32[50,5], index: 3, kind: input, shape index: {}]   ;;  %s2948_s4 = inlined_call_operand.vmem [shape: f32[1,5], index: 4, kind: input, shape index: {}]   ;;  %s2949_s5 = inlined_call_operand.vmem [shape: f32[2048,5], index: 5, kind: output, shape index: {}]  }
   0x1 LB: > { %s1838_s19 = sadd.s32 4294967295, %s2358_s18   ;;  %p1842_p0 = scmp.ge.s32.totalorder %s2358_s18, 1  ;;  %s2358_s18 = sphi %s2391_s18, %s15_s18  }
   0x2   : > { %p189_p1 = scmp.lt.s32.totalorder %s2358_s18, 5 }
   0x4   : > { %p190_p2 = pnand %p1842_p0, %p189_p1 }
   0x5   : > { %v2246_v0 = vld [vmem:[%s2945_s1] sm:$0xff] (!%p190_p2)   ;;  %v2360_v1 = vmov (!%p190_p2), 0   ;;  %v2247_v2 = vld [vmem:[%s2945_s1 + $0x8] sm:$0xff] (!%p190_p2)   ;;  %s1843_s24 = sshll.u32 (!%p190_p2), %s1838_s19, 6  ;;  %v2248_v3 = vld [vmem:[%s2945_s1 + $0x10] sm:$0xff] (!%p190_p2)   ;;  %vm667_vm0 = vcmask (!%p190_p2), 179200  }
   0x6   : > { %193 = sbr.rel (%p190_p2) target bundleno = 696 (0x2b8), region = 40  ;;  %768 = vmatprep.subr.bf16.mxu0 (!%p190_p2), %v2360_v1  ;;  %2217 = vmatprep.subr.bf16.mxu1 (!%p190_p2), %v2360_v1  ;;  %p219_p3 = scmp.lt.s32.totalorder (!%p190_p2), %s1843_s24, 255  ;;  %v2249_v4 = vld [vmem:[%s2945_s1 + $0x18] sm:$0xff] (!%p190_p2)   ;;  %v2250_v6 = vld [vmem:[%s2945_s1 + $0x20] sm:$0xff] (!%p190_p2)   ;;  %v2251_v7 = vld [vmem:[%s2945_s1 + $0x28] sm:$0xff] (!%p190_p2)   ;;  %vm764_vm1 = vcmask (!%p190_p2), 1042432  }
   0x7   : > { %769 = vmatpush1.bf16.msra.mxu0 (!%p190_p2), %v2246_v0  ;;  %2227 = vmatpush1.bf16.msra.mxu1 (!%p190_p2), %v2246_v0  ;;  %v2252_v8 = vld [vmem:[%s2945_s1 + $0x30] sm:$0xff] (!%p190_p2)   ;;  %v2253_v9 = vld [vmem:[%s2945_s1 + $0x38] sm:$0xff] (!%p190_p2)   ;;  %v2254_v10 = vld [vmem:[%s2945_s1 + $0x40] sm:$0xff] (!%p190_p2)   ;;  %vm1328_vm2 = vcmask (!%p190_p2), 1041408   ;;  %vm1135_vm3 = vcmask (!%p190_p2), 408576   ;;  %vm1717_vm4 = vcmask (!%p190_p2), 39936  }
   0x8   : > { %770 = vmatprep.subr.bf16.mxu0 (!%p190_p2), %v2360_v1  ;;  %2218 = vmatprep.subr.bf16.mxu1 (!%p190_p2), %v2360_v1  ;;  %v2255_v11 = vld [vmem:[%s2945_s1 + $0x48] ss:$0 sps:$4 sm:$0x77] (!%p190_p2)   ;;  %v1121_v40 = vld [vmem:[%s2947_s3] sm:$0xff] (!%p190_p2)  ;;  %v1123_v42 = vld [vmem:[%s2947_s3 + $0x10] sm:$0xff] (!%p190_p2) }
   0x9   : > { %v766_v12 = vsel (!%p190_p2), %vm764_vm1, %v2255_v11, 0  ;;  %v1122_v41 = vld [vmem:[%s2947_s3 + $0x8] sm:$0xff] (!%p190_p2)  ;;  %v1124_v43 = vld [vmem:[%s2947_s3 + $0x18] sm:$0xff] (!%p190_p2)  ;;  %v1125_v57 = vld [vmem:[%s2947_s3 + $0x20] sm:$0xff] (!%p190_p2) }
   0xa   : > { %v2205_v44 = vpack.c.bf16 (!%p190_p2), %v1122_v41, %v1121_v40  ;;  %v2209_v45 = vpack.c.bf16 (!%p190_p2), %v1124_v43, %v1123_v42  ;;  %v1126_v58 = vld [vmem:[%s2947_s3 + $0x28] sm:$0xff] (!%p190_p2)  ;;  %v1127_v62 = vld [vmem:[%s2947_s3 + $0x30] sm:$0x3] (!%p190_p2) }
   0xb   : > { %771 = vmatpush1.bf16.msra.mxu0 (!%p190_p2), %v2247_v2  ;;  %2228 = vmatpush1.bf16.msra.mxu1 (!%p190_p2), %v2247_v2  ;;  %v2213_v59 = vpack.c.bf16 (!%p190_p2), %v1126_v58, %v1125_v57 }
   0xc   : > { %772 = vmatprep.subr.bf16.mxu0 (!%p190_p2), %v2360_v1  ;;  %2219 = vmatprep.subr.bf16.mxu1 (!%p190_p2), %v2360_v1 }
   0xd   : > { %s2951_s24 = smov (!%p219_p3, %s1843_s24), 255 }
   0xe   : > { %s2023_s27 = sshll.u32 %s2951_s24, 3 }
   0xf   : > { %s2416_s30 = scalar_lea.vmem %s2944_s0, %s2023_s27  ;;  %773 = vmatpush1.bf16.msra.mxu0 %v2248_v3  ;;  %2229 = vmatpush1.bf16.msra.mxu1 %v2248_v3  ;;  %s2744_s19 = scalar_lea.vmem %s2949_s5, %s2023_s27 }
  0x10   : > { %v2258_v5 = vld [vmem:[%s2416_s30 + $0x4] ss:$8 sps:$4 sm:$0xff]   ;;  %774 = vmatprep.subr.bf16.mxu0 %v2360_v1  ;;  %2220 = vmatprep.subr.bf16.mxu1 %v2360_v1  ;;  %v2256_v13 = vld [vmem:[%s2416_s30] ss:$8 sps:$4 sm:$0xff]   ;;  %v2259_v14 = vld [vmem:[%s2416_s30 + $0x14] ss:$8 sps:$4 sm:$0xff]  }
  0x11   : > { %1923 = vmatprep.mubr.msk.bf16.mxu0 %vm667_vm0, %v2258_v5  ;;  %v2261_v15 = vld [vmem:[%s2416_s30 + $0x10] ss:$8 sps:$4 sm:$0xff]   ;;  %v2262_v16 = vld [vmem:[%s2416_s30 + $0x24] ss:$8 sps:$4 sm:$0xff]   ;;  %v2264_v17 = vld [vmem:[%s2416_s30 + $0x20] ss:$8 sps:$4 sm:$0xff]  }
  0x12   : > { %v2265_v18 = vld [vmem:[%s2416_s30 + $0x34] ss:$8 sps:$4 sm:$0xff]   ;;  %v2267_v19 = vld [vmem:[%s2416_s30 + $0x30] ss:$8 sps:$4 sm:$0xff]   ;;  %v2268_v20 = vld [vmem:[%s2416_s30 + $0x44] ss:$8 sps:$4 sm:$0xff]  }
  0x13   : > { %775 = vmatpush1.bf16.msra.mxu0 %v2249_v4  ;;  %2230 = vmatpush1.bf16.msra.mxu1 %v2249_v4  ;;  %v2318_v21 = vld [vmem:[%s2416_s30 + $0x184] ss:$8 sps:$4 sm:$0xff]   ;;  %v2316_v22 = vld [vmem:[%s2416_s30 + $0x180] ss:$8 sps:$4 sm:$0xff]   ;;  %v2271_v24 = vld [vmem:[%s2416_s30 + $0x54] ss:$8 sps:$4 sm:$0xff]  }
  0x14   : > { %776 = vmatprep.subr.bf16.mxu0 %v2360_v1  ;;  %2221 = vmatprep.subr.bf16.mxu1 %v2360_v1  ;;  %v2270_v23 = vld [vmem:[%s2416_s30 + $0x40] ss:$8 sps:$4 sm:$0xff]   ;;  %v2322_v25 = vld [vmem:[%s2416_s30 + $0x194] ss:$8 sps:$4 sm:$0xff]   ;;  %v2324_v26 = vld [vmem:[%s2416_s30 + $0x190] ss:$8 sps:$4 sm:$0xff]  }
  0x15   : > { %1947 = vmatprep.mubr.msk.bf16.mxu1 %vm667_vm0, %v2318_v21  ;;  %v2273_v27 = vld [vmem:[%s2416_s30 + $0x50] ss:$8 sps:$4 sm:$0xff]   ;;  %v2274_v28 = vld [vmem:[%s2416_s30 + $0x64] ss:$8 sps:$4 sm:$0xff]   ;;  %v2330_v30 = vld [vmem:[%s2416_s30 + $0x1a0] ss:$8 sps:$4 sm:$0xff]  }
  0x16   : > { %v2328_v29 = vld [vmem:[%s2416_s30 + $0x1a4] ss:$8 sps:$4 sm:$0xff]   ;;  %v2276_v31 = vld [vmem:[%s2416_s30 + $0x60] ss:$8 sps:$4 sm:$0xff]   ;;  %v2277_v32 = vld [vmem:[%s2416_s30 + $0x74] ss:$8 sps:$4 sm:$0xff]  }
  0x17   : > { %777 = vmatpush1.bf16.msra.mxu0 %v2250_v6  ;;  %2231 = vmatpush1.bf16.msra.mxu1 %v2250_v6  ;;  %v2334_v33 = vld [vmem:[%s2416_s30 + $0x1b4] ss:$8 sps:$4 sm:$0xff]   ;;  %v2336_v34 = vld [vmem:[%s2416_s30 + $0x1b0] ss:$8 sps:$4 sm:$0xff]   ;;  %v2280_v36 = vld [vmem:[%s2416_s30 + $0x84] ss:$8 sps:$4 sm:$0xff]  }
  0x18   : > { %778 = vmatprep.subr.bf16.mxu0 %v2360_v1  ;;  %2222 = vmatprep.subr.bf16.mxu1 %v2360_v1  ;;  %v2279_v35 = vld [vmem:[%s2416_s30 + $0x70] ss:$8 sps:$4 sm:$0xff]   ;;  %v2340_v37 = vld [vmem:[%s2416_s30 + $0x1c4] ss:$8 sps:$4 sm:$0xff]   ;;  %v2342_v38 = vld [vmem:[%s2416_s30 + $0x1c0] ss:$8 sps:$4 sm:$0xff]  }
  0x19   : > { %v2343_v39 = vld [vmem:[%s2416_s30 + $0x1d4] ss:$8 sps:$4 sm:$0xff]   ;;  %v2282_v46 = vld [vmem:[%s2416_s30 + $0x80] ss:$8 sps:$4 sm:$0xff]   ;;  %v2345_v48 = vld [vmem:[%s2416_s30 + $0x1d0] ss:$8 sps:$4 sm:$0xff]  }
  0x1a   : > { %v2283_v47 = vld [vmem:[%s2416_s30 + $0x94] ss:$8 sps:$4 sm:$0xff]   ;;  %v2346_v49 = vld [vmem:[%s2416_s30 + $0x1e4] ss:$8 sps:$4 sm:$0xff]   ;;  %v2285_v50 = vld [vmem:[%s2416_s30 + $0x90] ss:$8 sps:$4 sm:$0xff]  }
  0x1b   : > { %779 = vmatpush1.bf16.msra.mxu0 %v2251_v7  ;;  %2232 = vmatpush1.bf16.msra.mxu1 %v2251_v7  ;;  %v2286_v51 = vld [vmem:[%s2416_s30 + $0xa4] ss:$8 sps:$4 sm:$0xff]   ;;  %v2348_v52 = vld [vmem:[%s2416_s30 + $0x1e0] ss:$8 sps:$4 sm:$0xff]   ;;  %v2349_v53 = vld [vmem:[%s2416_s30 + $0x1f4] ss:$8 sps:$4 sm:$0xff]  }
  0x1c   : > { %780 = vmatprep.subr.bf16.mxu0 %v2360_v1  ;;  %2223 = vmatprep.subr.bf16.mxu1 %v2360_v1  ;;  %v2288_v54 = vld [vmem:[%s2416_s30 + $0xa0] ss:$8 sps:$4 sm:$0xff]   ;;  %v2289_v55 = vld [vmem:[%s2416_s30 + $0xb4] ss:$8 sps:$4 sm:$0xff]   ;;  %v2351_v56 = vld [vmem:[%s2416_s30 + $0x1f0] ss:$8 sps:$4 sm:$0xff]  }
  0x1d   : > { %v2291_v60 = vld [vmem:[%s2416_s30 + $0xb0] ss:$8 sps:$4 sm:$0xff]   ;;  %v2292_v61 = vld [vmem:[%s2416_s30 + $0xc4] ss:$8 sps:$4 sm:$0xff]   ;;  %v2294_v63 = vld [vmem:[%s2416_s30 + $0xc0] ss:$8 sps:$4 sm:$0xff]  }
  0x1e   : > { %v2295_v0 = vld [vmem:[%s2416_s30 + $0xd4] ss:$8 sps:$4 sm:$0xff]   ;;  %v2298_v2 = vld [vmem:[%s2416_s30 + $0xe4] ss:$8 sps:$4 sm:$0xff]   ;;  %v2300_v3 = vld [vmem:[%s2416_s30 + $0xe0] ss:$8 sps:$4 sm:$0xff]  }
  0x1f   : > { %781 = vmatpush1.bf16.msra.mxu0 %v2252_v8  ;;  %2233 = vmatpush1.bf16.msra.mxu1 %v2252_v8  ;;  %v2301_v4 = vld [vmem:[%s2416_s30 + $0xf4] ss:$8 sps:$4 sm:$0xff]   ;;  %v2303_v5 = vld [vmem:[%s2416_s30 + $0xf0] ss:$8 sps:$4 sm:$0xff]   ;;  %v2304_v6 = vld [vmem:[%s2416_s30 + $0x104] ss:$8 sps:$4 sm:$0xff]  }
  0x20   : > { %782 = vmatprep.subr.bf16.mxu0 %v2360_v1  ;;  %2224 = vmatprep.subr.bf16.mxu1 %v2360_v1  ;;  %v2306_v7 = vld [vmem:[%s2416_s30 + $0x100] ss:$8 sps:$4 sm:$0xff]   ;;  %v2307_v8 = vld [vmem:[%s2416_s30 + $0x114] ss:$8 sps:$4 sm:$0xff]   ;;  %v2339_v21 = vld [vmem:[%s2416_s30 + $0x170] ss:$8 sps:$4 sm:$0xff]  }
  0x21   : > { %v2312_v11 = vld [vmem:[%s2416_s30 + $0x120] ss:$8 sps:$4 sm:$0xff]  }
  0x23   : > { %783 = vmatpush1.bf16.msra.mxu0 %v2253_v9  ;;  %2234 = vmatpush1.bf16.msra.mxu1 %v2253_v9  ;;  %v2309_v9 = vld [vmem:[%s2416_s30 + $0x110] ss:$8 sps:$4 sm:$0xff]  }
  0x24   : > { %784 = vmatprep.subr.bf16.mxu0 %v2360_v1  ;;  %2225 = vmatprep.subr.bf16.mxu1 %v2360_v1 }
  0x27   : > { %785 = vmatpush1.bf16.msra.mxu0 %v2254_v10  ;;  %2235 = vmatpush1.bf16.msra.mxu1 %v2254_v10  ;;  %v2310_v10 = vld [vmem:[%s2416_s30 + $0x124] ss:$8 sps:$4 sm:$0xff]  }
  0x28   : > { %786 = vmatprep.subr.bf16.mxu0 %v2360_v1  ;;  %2226 = vmatprep.subr.bf16.mxu1 %v2360_v1  ;;  %v2297_v1 = vld [vmem:[%s2416_s30 + $0xd0] ss:$8 sps:$4 sm:$0xff]  }
  0x2b   : > { %787 = vmatpush1.bf16.msra.mxu0 %v766_v12  ;;  %2236 = vmatpush1.bf16.msra.mxu1 %v766_v12  ;;  %v2313_v12 = vld [vmem:[%s2416_s30 + $0x134] ss:$8 sps:$4 sm:$0xff]  }
  0x2c   : > { %2206 = vmatprep.subr.bf16.mxu1 %v2205_v44 }
  0x2e   : > { %801 = vmatmul.mubr.bf16.vlgmr.msra.gmra.mrb[0].mxu0 %v2256_v13  ;;  %993 = vmatmul.mubr.bf16.vlgmr.msra.gmra.mrb[0].mxu1 %v2316_v22  ;;  %v2315_v13 = vld [vmem:[%s2416_s30 + $0x130] ss:$8 sps:$4 sm:$0xff]   ;;  %v2559_v22 = vld [vmem:[%s2946_s2] ss:$0 sm:$0xff] }
  0x2f   : > { %1924 = vmatprep.mubr.msk.bf16.mxu0 %vm667_vm0, %v2259_v14  ;;  %1948 = vmatprep.mubr.msk.bf16.mxu1 %vm667_vm0, %v2322_v25  ;;  %v2319_v14 = vld [vmem:[%s2416_s30 + $0x144] ss:$8 sps:$4 sm:$0xff]  }
  0x30   : > { %2208 = vmatpush3.bf16.msra.mxu1 %v2205_v44 }
  0x31   : > { %2210 = vmatprep.subr.bf16.mxu1 %v2209_v45 }
  0x34   : > { %2212 = vmatpush3.bf16.msra.mxu1 %v2209_v45 }
  0x35   : > { %2214 = vmatprep.subr.bf16.mxu1 %v2213_v59 }
  0x36   : > { %809 = vmatmul.mubr.bf16.gmra.mrb[4].mxu0 %v2261_v15  ;;  %1001 = vmatmul.mubr.bf16.gmra.mrb[4].mxu1 %v2324_v26  ;;  %v2321_v15 = vld [vmem:[%s2416_s30 + $0x140] ss:$8 sps:$4 sm:$0xff]  }
  0x37   : > { %1925 = vmatprep.mubr.msk.bf16.mxu0 %vm667_vm0, %v2262_v16  ;;  %1949 = vmatprep.mubr.msk.bf16.mxu1 %vm667_vm0, %v2328_v29  ;;  %v2325_v16 = vld [vmem:[%s2416_s30 + $0x154] ss:$8 sps:$4 sm:$0xff]  }
  0x38   : > { %2216 = vmatpush3.bf16.msra.mxu1 %v2213_v59 }
  0x39   : > { %2107 = vmatprep.subr.msk.mxu1 %vm1328_vm2, %v1127_v62 }
  0x3c   : > { %2108 = vmatpush3.msk.msra.mxu1 %vm1328_vm2, %v1127_v62 }
  0x3e   : > { %817 = vmatmul.mubr.bf16.gmra.mrb[8].mxu0 %v2264_v17  ;;  %1009 = vmatmul.mubr.bf16.gmra.mrb[8].mxu1 %v2330_v30  ;;  %v2327_v17 = vld [vmem:[%s2416_s30 + $0x150] ss:$8 sps:$4 sm:$0xff]  }
  0x3f   : > { %1926 = vmatprep.mubr.msk.bf16.mxu0 %vm667_vm0, %v2265_v18  ;;  %1950 = vmatprep.mubr.msk.bf16.mxu1 %vm667_vm0, %v2334_v33  ;;  %v2331_v18 = vld [vmem:[%s2416_s30 + $0x164] ss:$8 sps:$4 sm:$0xff]  }
  0x46   : > { %825 = vmatmul.mubr.bf16.gmra.mrb[12].mxu0 %v2267_v19  ;;  %1017 = vmatmul.mubr.bf16.gmra.mrb[12].mxu1 %v2336_v34  ;;  %v2333_v19 = vld [vmem:[%s2416_s30 + $0x160] ss:$8 sps:$4 sm:$0xff]  }
  0x47   : > { %1927 = vmatprep.mubr.msk.bf16.mxu0 %vm667_vm0, %v2268_v20  ;;  %1951 = vmatprep.mubr.msk.bf16.mxu1 %vm667_vm0, %v2340_v37  ;;  %v2337_v20 = vld [vmem:[%s2416_s30 + $0x174] ss:$8 sps:$4 sm:$0xff]  }
  0x4e   : > { %833 = vmatmul.mubr.bf16.gmra.mrb[16].mxu0 %v2270_v23  ;;  %1025 = vmatmul.mubr.bf16.gmra.mrb[16].mxu1 %v2342_v38 }
  0x4f   : > { %1928 = vmatprep.mubr.msk.bf16.mxu0 %vm667_vm0, %v2271_v24  ;;  %1952 = vmatprep.mubr.msk.bf16.mxu1 %vm667_vm0, %v2343_v39 }
  0x56   : > { %841 = vmatmul.mubr.bf16.gmra.mrb[20].mxu0 %v2273_v27  ;;  %1033 = vmatmul.mubr.bf16.gmra.mrb[20].mxu1 %v2345_v48 }
  0x57   : > { %1929 = vmatprep.mubr.msk.bf16.mxu0 %vm667_vm0, %v2274_v28  ;;  %1953 = vmatprep.mubr.msk.bf16.mxu1 %vm667_vm0, %v2346_v49 }
  0x5e   : > { %849 = vmatmul.mubr.bf16.gmra.mrb[24].mxu0 %v2276_v31  ;;  %1041 = vmatmul.mubr.bf16.gmra.mrb[24].mxu1 %v2348_v52 }
  0x5f   : > { %1930 = vmatprep.mubr.msk.bf16.mxu0 %vm667_vm0, %v2277_v32  ;;  %1954 = vmatprep.mubr.msk.bf16.mxu1 %vm667_vm0, %v2349_v53 }
  0x66   : > { %857 = vmatmul.mubr.bf16.gmra.mrb[28].mxu0 %v2279_v35  ;;  %1049 = vmatmul.mubr.bf16.gmra.mrb[28].mxu1 %v2351_v56 }
  0x67   : > { %1931 = vmatprep.mubr.msk.bf16.mxu0 %vm667_vm0, %v2280_v36 }
  0x6e   : > { %865 = vmatmul.mubr.bf16.gmra.mrb[32].mxu0 %v2282_v46 }
  0x6f   : > { %1932 = vmatprep.mubr.msk.bf16.mxu0 %vm667_vm0, %v2283_v47 }
  0x76   : > { %873 = vmatmul.mubr.bf16.gmra.mrb[36].mxu0 %v2285_v50 }
  0x77   : > { %1933 = vmatprep.mubr.msk.bf16.mxu0 %vm667_vm0, %v2286_v51 }
  0x7e   : > { %881 = vmatmul.mubr.bf16.gmra.mrb[40].mxu0 %v2288_v54 }
  0x7f   : > { %1934 = vmatprep.mubr.msk.bf16.mxu0 %vm667_vm0, %v2289_v55 }
  0x86   : > { %889 = vmatmul.mubr.bf16.gmra.mrb[44].mxu0 %v2291_v60 }
  0x87   : > { %1935 = vmatprep.mubr.msk.bf16.mxu0 %vm667_vm0, %v2292_v61 }
  0x8e   : > { %897 = vmatmul.mubr.bf16.gmra.mrb[48].mxu0 %v2294_v63 }
  0x8f   : > { %1936 = vmatprep.mubr.msk.bf16.mxu0 %vm667_vm0, %v2295_v0 }
  0x96   : > { %905 = vmatmul.mubr.bf16.gmra.mrb[52].mxu0 %v2297_v1 }
  0x97   : > { %1937 = vmatprep.mubr.msk.bf16.mxu0 %vm667_vm0, %v2298_v2 }
  0x9e   : > { %913 = vmatmul.mubr.bf16.gmra.mrb[56].mxu0 %v2300_v3 }
  0x9f   : > { %1938 = vmatprep.mubr.msk.bf16.mxu0 %vm667_vm0, %v2301_v4 }
  0xa6   : > { %921 = vmatmul.mubr.bf16.gmra.mrb[60].mxu0 %v2303_v5 }
  0xa7   : > { %1939 = vmatprep.mubr.msk.bf16.mxu0 %vm667_vm0, %v2304_v6 }
  0xae   : > { %929 = vmatmul.mubr.bf16.gmra.mrb[64].mxu0 %v2306_v7 }
  0xaf   : > { %1940 = vmatprep.mubr.msk.bf16.mxu0 %vm667_vm0, %v2307_v8 }
  0xb6   : > { %937 = vmatmul.mubr.bf16.gmra.mrb[68].mxu0 %v2309_v9 }
  0xb7   : > { %1941 = vmatprep.mubr.msk.bf16.mxu0 %vm667_vm0, %v2310_v10 }
  0xbe   : > { %945 = vmatmul.mubr.bf16.gmra.mrb[72].mxu0 %v2312_v11 }
  0xbf   : > { %1942 = vmatprep.mubr.msk.bf16.mxu0 %vm667_vm0, %v2313_v12 }
  0xc6   : > { %953 = vmatmul.mubr.bf16.gmra.mrb[76].mxu0 %v2315_v13 }
  0xc7   : > { %1943 = vmatprep.mubr.msk.bf16.mxu0 %vm667_vm0, %v2319_v14 }
  0xce   : > { %961 = vmatmul.mubr.bf16.gmra.mrb[80].mxu0 %v2321_v15 }
  0xcf   : > { %1944 = vmatprep.mubr.msk.bf16.mxu0 %vm667_vm0, %v2325_v16 }
  0xd6   : > { %969 = vmatmul.mubr.bf16.gmra.mrb[84].mxu0 %v2327_v17 }
  0xd7   : > { %1945 = vmatprep.mubr.msk.bf16.mxu0 %vm667_vm0, %v2331_v18 }
  0xde   : > { %977 = vmatmul.mubr.bf16.gmra.mrb[88].mxu0 %v2333_v19 }
  0xdf   : > { %1946 = vmatprep.mubr.msk.bf16.mxu0 %vm667_vm0, %v2337_v20 }
  0xe6   : > { %985 = vmatmul.mubr.bf16.gmra.mrb[92].mxu0 %v2339_v21 }
 0x101   : > { %v802_v23 = vpop.f32.mrb[0].mxu0  ;;  %v2576_v55 = vpop.f32.mrb[0].mxu1 }
 0x102   : > { %v803_v24 = vadd.f32 %v2559_v22, %v802_v23  ;;  %v804_v25 = vpop.f32.mrb[1].mxu0  ;;  %v996_v56 = vpop.f32.mrb[1].mxu1 }
 0x103   : > { %v805_v26 = vpop.f32.mrb[2].mxu0  ;;  %v2579_v57 = vpop.f32.mrb[2].mxu1 }
 0x104   : > { %v1057_v27 = vmax.f32 %v803_v24, 0.0  ;;  %v806_v28 = vadd.f32 %v2559_v22, %v805_v26  ;;  %v807_v29 = vpop.f32.mrb[3].mxu0  ;;  %v999_v59 = vpop.f32.mrb[3].mxu1 }
 0x106   : > { %v1058_v30 = vmax.f32 %v806_v28, 0.0  ;;  %2109 = vmatprep.mubr.msk.f32.mxu1 %vm1135_vm3, %v1057_v27 }
 0x108   : > { %2110 = vmatmul.mubr.msk.f32.vlgmr.msra.gmra.mrb[32].mxu1 %vm1135_vm3, %v1058_v30 }
 0x109   : > { %v810_v31 = vpop.f32.mrb[4].mxu0  ;;  %v2584_v3 = vpop.f32.mrb[4].mxu1 }
 0x10a   : > { %v811_v32 = vadd.f32 %v2559_v22, %v810_v31  ;;  %v812_v33 = vpop.f32.mrb[5].mxu0  ;;  %v1004_v4 = vpop.f32.mrb[5].mxu1 }
 0x10b   : > { %v813_v34 = vpop.f32.mrb[6].mxu0  ;;  %v2587_v5 = vpop.f32.mrb[6].mxu1 }
 0x10c   : > { %v1059_v35 = vmax.f32 %v811_v32, 0.0  ;;  %v814_v36 = vadd.f32 %v2559_v22, %v813_v34  ;;  %v815_v37 = vpop.f32.mrb[7].mxu0  ;;  %v1007_v7 = vpop.f32.mrb[7].mxu1 }
 0x10e   : > { %v1060_v38 = vmax.f32 %v814_v36, 0.0  ;;  %2112 = vmatprep.mubr.msk.f32.mxu1 %vm1135_vm3, %v1059_v35 }
 0x110   : > { %2113 = vmatmul.mubr.msk.f32.gmra.mrb[34].mxu1 %vm1135_vm3, %v1060_v38 }
 0x111   : > { %v818_v39 = vpop.f32.mrb[8].mxu0  ;;  %v2592_v15 = vpop.f32.mrb[8].mxu1 }
 0x112   : > { %v819_v40 = vadd.f32 %v2559_v22, %v818_v39  ;;  %v820_v41 = vpop.f32.mrb[9].mxu0  ;;  %v1012_v16 = vpop.f32.mrb[9].mxu1 }
 0x113   : > { %v821_v42 = vpop.f32.mrb[10].mxu0  ;;  %v2595_v17 = vpop.f32.mrb[10].mxu1 }
 0x114   : > { %v1061_v43 = vmax.f32 %v819_v40, 0.0  ;;  %v822_v44 = vadd.f32 %v2559_v22, %v821_v42  ;;  %v823_v45 = vpop.f32.mrb[11].mxu0  ;;  %v1015_v19 = vpop.f32.mrb[11].mxu1 }
 0x116   : > { %v1062_v46 = vmax.f32 %v822_v44, 0.0  ;;  %2115 = vmatprep.mubr.msk.f32.mxu1 %vm1135_vm3, %v1061_v43 }
 0x118   : > { %2116 = vmatmul.mubr.msk.f32.gmra.mrb[36].mxu1 %vm1135_vm3, %v1062_v46 }
 0x119   : > { %v826_v47 = vpop.f32.mrb[12].mxu0  ;;  %v2600_v28 = vpop.f32.mrb[12].mxu1 }
 0x11a   : > { %v827_v48 = vadd.f32 %v2559_v22, %v826_v47  ;;  %v828_v49 = vpop.f32.mrb[13].mxu0  ;;  %v1020_v29 = vpop.f32.mrb[13].mxu1 }
 0x11b   : > { %v829_v50 = vpop.f32.mrb[14].mxu0  ;;  %v2603_v30 = vpop.f32.mrb[14].mxu1 }
 0x11c   : > { %v1063_v51 = vmax.f32 %v827_v48, 0.0  ;;  %v830_v52 = vadd.f32 %v2559_v22, %v829_v50  ;;  %v831_v53 = vpop.f32.mrb[15].mxu0  ;;  %v1023_v32 = vpop.f32.mrb[15].mxu1 }
 0x11e   : > { %v1064_v54 = vmax.f32 %v830_v52, 0.0  ;;  %2118 = vmatprep.mubr.msk.f32.mxu1 %vm1135_vm3, %v1063_v51 }
 0x120   : > { %2119 = vmatmul.mubr.msk.f32.gmra.mrb[38].mxu1 %vm1135_vm3, %v1064_v54 }
 0x121   : > { %v834_v58 = vpop.f32.mrb[16].mxu0  ;;  %v2608_v40 = vpop.f32.mrb[16].mxu1 }
 0x122   : > { %v835_v60 = vadd.f32 %v2559_v22, %v834_v58  ;;  %v836_v61 = vpop.f32.mrb[17].mxu0  ;;  %v1028_v41 = vpop.f32.mrb[17].mxu1 }
 0x123   : > { %v837_v62 = vpop.f32.mrb[18].mxu0  ;;  %v2611_v42 = vpop.f32.mrb[18].mxu1 }
 0x124   : > { %v1065_v63 = vmax.f32 %v835_v60, 0.0  ;;  %v838_v0 = vadd.f32 %v2559_v22, %v837_v62  ;;  %v839_v1 = vpop.f32.mrb[19].mxu0  ;;  %v1031_v44 = vpop.f32.mrb[19].mxu1 }
 0x126   : > { %v1066_v2 = vmax.f32 %v838_v0, 0.0  ;;  %2121 = vmatprep.mubr.msk.f32.mxu1 %vm1135_vm3, %v1065_v63 }
 0x128   : > { %2122 = vmatmul.mubr.msk.f32.gmra.mrb[40].mxu1 %vm1135_vm3, %v1066_v2 }
 0x129   : > { %v842_v6 = vpop.f32.mrb[20].mxu0  ;;  %v2615_v51 = vpop.f32.mrb[20].mxu1 }
 0x12a   : > { %v843_v8 = vadd.f32 %v2559_v22, %v842_v6  ;;  %v844_v9 = vpop.f32.mrb[21].mxu0  ;;  %v1036_v53 = vpop.f32.mrb[21].mxu1 }
 0x12b   : > { %v845_v10 = vpop.f32.mrb[22].mxu0  ;;  %v2618_v54 = vpop.f32.mrb[22].mxu1 }
 0x12c   : > { %v1067_v11 = vmax.f32 %v843_v8, 0.0  ;;  %v846_v12 = vadd.f32 %v2559_v22, %v845_v10  ;;  %v847_v13 = vpop.f32.mrb[23].mxu0  ;;  %v1039_v56 = vpop.f32.mrb[23].mxu1 }
 0x12e   : > { %v1068_v14 = vmax.f32 %v846_v12, 0.0  ;;  %2124 = vmatprep.mubr.msk.f32.mxu1 %vm1135_vm3, %v1067_v11 }
 0x130   : > { %2125 = vmatmul.mubr.msk.f32.gmra.mrb[42].mxu1 %vm1135_vm3, %v1068_v14 }
 0x131   : > { %v850_v18 = vpop.f32.mrb[24].mxu0  ;;  %v2623_v1 = vpop.f32.mrb[24].mxu1 }
 0x132   : > { %v851_v20 = vadd.f32 %v2559_v22, %v850_v18  ;;  %v852_v21 = vpop.f32.mrb[25].mxu0  ;;  %v1044_v4 = vpop.f32.mrb[25].mxu1 }
 0x133   : > { %v853_v23 = vpop.f32.mrb[26].mxu0  ;;  %v2626_v6 = vpop.f32.mrb[26].mxu1 }
 0x134   : > { %v1069_v24 = vmax.f32 %v851_v20, 0.0  ;;  %v854_v25 = vadd.f32 %v2559_v22, %v853_v23  ;;  %v855_v26 = vpop.f32.mrb[27].mxu0  ;;  %v1047_v7 = vpop.f32.mrb[27].mxu1 }
 0x136   : > { %v1070_v27 = vmax.f32 %v854_v25, 0.0  ;;  %2127 = vmatprep.mubr.msk.f32.mxu1 %vm1135_vm3, %v1069_v24 }
 0x138   : > { %2128 = vmatmul.mubr.msk.f32.gmra.mrb[44].mxu1 %vm1135_vm3, %v1070_v27 }
 0x139   : > { %v858_v31 = vpop.f32.mrb[28].mxu0  ;;  %v2631_v16 = vpop.f32.mrb[28].mxu1 }
 0x13a   : > { %v859_v33 = vadd.f32 %v2559_v22, %v858_v31  ;;  %v860_v34 = vpop.f32.mrb[29].mxu0  ;;  %v1052_v19 = vpop.f32.mrb[29].mxu1 }
 0x13b   : > { %v861_v35 = vpop.f32.mrb[30].mxu0  ;;  %v2634_v20 = vpop.f32.mrb[30].mxu1 }
 0x13c   : > { %v1071_v36 = vmax.f32 %v859_v33, 0.0  ;;  %v862_v37 = vadd.f32 %v2559_v22, %v861_v35  ;;  %v863_v38 = vpop.f32.mrb[31].mxu0  ;;  %v1055_v21 = vpop.f32.mrb[31].mxu1 }
 0x13e   : > { %v1072_v39 = vmax.f32 %v862_v37, 0.0  ;;  %2130 = vmatprep.mubr.msk.f32.mxu1 %vm1135_vm3, %v1071_v36 }
 0x140   : > { %2131 = vmatmul.mubr.msk.f32.gmra.mrb[46].mxu1 %vm1135_vm3, %v1072_v39 }
 0x141   : > { %v866_v43 = vpop.f32.mrb[32].mxu0 }
 0x142   : > { %v867_v45 = vadd.f32 %v2559_v22, %v866_v43  ;;  %v868_v46 = vpop.f32.mrb[33].mxu0 }
 0x143   : > { %v869_v47 = vpop.f32.mrb[34].mxu0 }
 0x144   : > { %v1073_v48 = vmax.f32 %v867_v45, 0.0  ;;  %v870_v49 = vadd.f32 %v2559_v22, %v869_v47  ;;  %v871_v50 = vpop.f32.mrb[35].mxu0 }
 0x146   : > { %v1074_v52 = vmax.f32 %v870_v49, 0.0  ;;  %2133 = vmatprep.mubr.msk.f32.mxu1 %vm1135_vm3, %v1073_v48 }
 0x148   : > { %2134 = vmatmul.mubr.msk.f32.gmra.mrb[48].mxu1 %vm1135_vm3, %v1074_v52 }
 0x149   : > { %v874_v58 = vpop.f32.mrb[36].mxu0 }
 0x14a   : > { %v875_v59 = vadd.f32 %v2559_v22, %v874_v58  ;;  %v876_v60 = vpop.f32.mrb[37].mxu0 }
 0x14b   : > { %v877_v61 = vpop.f32.mrb[38].mxu0 }
 0x14c   : > { %v1075_v62 = vmax.f32 %v875_v59, 0.0  ;;  %v878_v63 = vadd.f32 %v2559_v22, %v877_v61  ;;  %v879_v0 = vpop.f32.mrb[39].mxu0 }
 0x14e   : > { %v1076_v2 = vmax.f32 %v878_v63, 0.0  ;;  %2136 = vmatprep.mubr.msk.f32.mxu1 %vm1135_vm3, %v1075_v62 }
 0x150   : > { %2137 = vmatmul.mubr.msk.f32.gmra.mrb[50].mxu1 %vm1135_vm3, %v1076_v2 }
 0x151   : > { %v882_v8 = vpop.f32.mrb[40].mxu0 }
 0x152   : > { %v883_v9 = vadd.f32 %v2559_v22, %v882_v8  ;;  %v884_v10 = vpop.f32.mrb[41].mxu0 }
 0x153   : > { %v885_v11 = vpop.f32.mrb[42].mxu0 }
 0x154   : > { %v1077_v12 = vmax.f32 %v883_v9, 0.0  ;;  %v886_v13 = vadd.f32 %v2559_v22, %v885_v11  ;;  %v887_v14 = vpop.f32.mrb[43].mxu0 }
 0x156   : > { %v1078_v18 = vmax.f32 %v886_v13, 0.0  ;;  %2139 = vmatprep.mubr.msk.f32.mxu1 %vm1135_vm3, %v1077_v12 }
 0x158   : > { %2140 = vmatmul.mubr.msk.f32.gmra.mrb[52].mxu1 %vm1135_vm3, %v1078_v18 }
 0x159   : > { %v890_v23 = vpop.f32.mrb[44].mxu0 }
 0x15a   : > { %v891_v24 = vadd.f32 %v2559_v22, %v890_v23  ;;  %v892_v25 = vpop.f32.mrb[45].mxu0 }
 0x15b   : > { %v893_v26 = vpop.f32.mrb[46].mxu0 }
 0x15c   : > { %v1079_v27 = vmax.f32 %v891_v24, 0.0  ;;  %v894_v29 = vadd.f32 %v2559_v22, %v893_v26  ;;  %v895_v31 = vpop.f32.mrb[47].mxu0 }
 0x15e   : > { %v1080_v32 = vmax.f32 %v894_v29, 0.0  ;;  %2142 = vmatprep.mubr.msk.f32.mxu1 %vm1135_vm3, %v1079_v27 }
 0x160   : > { %2143 = vmatmul.mubr.msk.f32.gmra.mrb[54].mxu1 %vm1135_vm3, %v1080_v32 }
 0x161   : > { %v898_v33 = vpop.f32.mrb[48].mxu0 }
 0x162   : > { %v899_v34 = vadd.f32 %v2559_v22, %v898_v33  ;;  %v900_v35 = vpop.f32.mrb[49].mxu0 }
 0x163   : > { %v901_v36 = vpop.f32.mrb[50].mxu0 }
 0x164   : > { %v1081_v37 = vmax.f32 %v899_v34, 0.0  ;;  %v902_v38 = vadd.f32 %v2559_v22, %v901_v36  ;;  %v903_v39 = vpop.f32.mrb[51].mxu0 }
 0x166   : > { %v1082_v41 = vmax.f32 %v902_v38, 0.0  ;;  %2145 = vmatprep.mubr.msk.f32.mxu1 %vm1135_vm3, %v1081_v37 }
 0x168   : > { %2146 = vmatmul.mubr.msk.f32.gmra.mrb[56].mxu1 %vm1135_vm3, %v1082_v41 }
 0x169   : > { %v906_v43 = vpop.f32.mrb[52].mxu0 }
 0x16a   : > { %v907_v44 = vadd.f32 %v2559_v22, %v906_v43  ;;  %v908_v45 = vpop.f32.mrb[53].mxu0 }
 0x16b   : > { %v909_v46 = vpop.f32.mrb[54].mxu0 }
 0x16c   : > { %v1083_v47 = vmax.f32 %v907_v44, 0.0  ;;  %v910_v48 = vadd.f32 %v2559_v22, %v909_v46  ;;  %v911_v49 = vpop.f32.mrb[55].mxu0 }
 0x16e   : > { %v1084_v50 = vmax.f32 %v910_v48, 0.0  ;;  %2148 = vmatprep.mubr.msk.f32.mxu1 %vm1135_vm3, %v1083_v47 }
 0x170   : > { %2149 = vmatmul.mubr.msk.f32.gmra.mrb[58].mxu1 %vm1135_vm3, %v1084_v50 }
 0x171   : > { %v914_v52 = vpop.f32.mrb[56].mxu0 }
 0x172   : > { %v915_v53 = vadd.f32 %v2559_v22, %v914_v52  ;;  %v916_v56 = vpop.f32.mrb[57].mxu0 }
 0x173   : > { %v917_v58 = vpop.f32.mrb[58].mxu0 }
 0x174   : > { %v1085_v59 = vmax.f32 %v915_v53, 0.0  ;;  %v918_v60 = vadd.f32 %v2559_v22, %v917_v58  ;;  %v919_v61 = vpop.f32.mrb[59].mxu0 }
 0x176   : > { %v1086_v62 = vmax.f32 %v918_v60, 0.0  ;;  %2151 = vmatprep.mubr.msk.f32.mxu1 %vm1135_vm3, %v1085_v59 }
 0x178   : > { %2152 = vmatmul.mubr.msk.f32.gmra.mrb[60].mxu1 %vm1135_vm3, %v1086_v62 }
 0x179   : > { %v922_v63 = vpop.f32.mrb[60].mxu0 }
 0x17a   : > { %v923_v0 = vadd.f32 %v2559_v22, %v922_v63  ;;  %v924_v2 = vpop.f32.mrb[61].mxu0 }
 0x17b   : > { %v925_v4 = vpop.f32.mrb[62].mxu0 }
 0x17c   : > { %v1087_v7 = vmax.f32 %v923_v0, 0.0  ;;  %v926_v8 = vadd.f32 %v2559_v22, %v925_v4  ;;  %v927_v9 = vpop.f32.mrb[63].mxu0 }
 0x17e   : > { %v1088_v10 = vmax.f32 %v926_v8, 0.0  ;;  %2154 = vmatprep.mubr.msk.f32.mxu1 %vm1135_vm3, %v1087_v7 }
 0x180   : > { %2155 = vmatmul.mubr.msk.f32.gmra.mrb[62].mxu1 %vm1135_vm3, %v1088_v10 }
 0x181   : > { %v930_v11 = vpop.f32.mrb[64].mxu0 }
 0x182   : > { %v931_v12 = vadd.f32 %v2559_v22, %v930_v11  ;;  %v932_v13 = vpop.f32.mrb[65].mxu0 }
 0x183   : > { %v933_v14 = vpop.f32.mrb[66].mxu0 }
 0x184   : > { %v1089_v18 = vmax.f32 %v931_v12, 0.0  ;;  %v934_v19 = vadd.f32 %v2559_v22, %v933_v14  ;;  %v935_v21 = vpop.f32.mrb[67].mxu0 }
 0x186   : > { %v1090_v23 = vmax.f32 %v934_v19, 0.0  ;;  %2157 = vmatprep.mubr.msk.f32.mxu1 %vm1135_vm3, %v1089_v18 }
 0x188   : > { %2158 = vmatmul.mubr.msk.f32.gmra.mrb[64].mxu1 %vm1135_vm3, %v1090_v23 }
 0x189   : > { %v938_v24 = vpop.f32.mrb[68].mxu0 }
 0x18a   : > { %v939_v25 = vadd.f32 %v2559_v22, %v938_v24  ;;  %v940_v26 = vpop.f32.mrb[69].mxu0 }
 0x18b   : > { %v941_v27 = vpop.f32.mrb[70].mxu0 }
 0x18c   : > { %v1091_v29 = vmax.f32 %v939_v25, 0.0  ;;  %v942_v31 = vadd.f32 %v2559_v22, %v941_v27  ;;  %v943_v32 = vpop.f32.mrb[71].mxu0 }
 0x18e   : > { %v1092_v33 = vmax.f32 %v942_v31, 0.0  ;;  %2160 = vmatprep.mubr.msk.f32.mxu1 %vm1135_vm3, %v1091_v29  ;;  %v995_v29 = vadd.f32 %v2559_v22, %v2576_v55 }
 0x190   : > { %2161 = vmatmul.mubr.msk.f32.gmra.mrb[66].mxu1 %vm1135_vm3, %v1092_v33 }
 0x191   : > { %v946_v34 = vpop.f32.mrb[72].mxu0 }
 0x192   : > { %v947_v35 = vadd.f32 %v2559_v22, %v946_v34  ;;  %v948_v36 = vpop.f32.mrb[73].mxu0 }
 0x193   : > { %v949_v37 = vpop.f32.mrb[74].mxu0 }
 0x194   : > { %v1093_v38 = vmax.f32 %v947_v35, 0.0  ;;  %v950_v39 = vadd.f32 %v2559_v22, %v949_v37  ;;  %v951_v41 = vpop.f32.mrb[75].mxu0  ;;  %v998_v35 = vadd.f32 %v2559_v22, %v2579_v57  ;;  %v1105_v37 = vmax.f32 %v995_v29, 0.0 }
 0x196   : > { %v1094_v43 = vmax.f32 %v950_v39, 0.0  ;;  %2163 = vmatprep.mubr.msk.f32.mxu1 %vm1135_vm3, %v1093_v38  ;;  %v1003_v38 = vadd.f32 %v2559_v22, %v2584_v3  ;;  %v1106_v55 = vmax.f32 %v998_v35, 0.0  ;;  %v1006_v39 = vadd.f32 %v2559_v22, %v2587_v5 }
 0x197   : > { %v1014_v3 = vadd.f32 %v2559_v22, %v2595_v17 }
 0x198   : > { %2164 = vmatmul.mubr.msk.f32.gmra.mrb[68].mxu1 %vm1135_vm3, %v1094_v43  ;;  %v1107_v41 = vmax.f32 %v1003_v38, 0.0  ;;  %v1011_v43 = vadd.f32 %v2559_v22, %v2592_v15  ;;  %v1108_v57 = vmax.f32 %v1006_v39, 0.0  ;;  %v1022_v15 = vadd.f32 %v2559_v22, %v2603_v30 }
 0x199   : > { %v954_v44 = vpop.f32.mrb[76].mxu0  ;;  %v1110_v5 = vmax.f32 %v1014_v3, 0.0 }
 0x19a   : > { %v955_v45 = vadd.f32 %v2559_v22, %v954_v44  ;;  %v956_v46 = vpop.f32.mrb[77].mxu0  ;;  %v1109_v44 = vmax.f32 %v1011_v43, 0.0  ;;  %v1112_v17 = vmax.f32 %v1022_v15, 0.0 }
 0x19b   : > { %v957_v47 = vpop.f32.mrb[78].mxu0 }
 0x19c   : > { %v1095_v48 = vmax.f32 %v955_v45, 0.0  ;;  %v958_v49 = vadd.f32 %v2559_v22, %v957_v47  ;;  %v959_v50 = vpop.f32.mrb[79].mxu0  ;;  %v1019_v45 = vadd.f32 %v2559_v22, %v2600_v28  ;;  %v1027_v47 = vadd.f32 %v2559_v22, %v2608_v40 }
 0x19d   : > { %v1030_v28 = vadd.f32 %v2559_v22, %v2611_v42  ;;  %v1038_v40 = vadd.f32 %v2559_v22, %v2618_v54  ;;  %v1051_v42 = vadd.f32 %v2559_v22, %v2631_v16  ;;  %v2735_v54 = vld [vmem:[%s2948_s4] ss:$0 sm:$0xff] }
 0x19e   : > { %v1096_v52 = vmax.f32 %v958_v49, 0.0  ;;  %2166 = vmatprep.mubr.msk.f32.mxu1 %vm1135_vm3, %v1095_v48  ;;  %v1111_v46 = vmax.f32 %v1019_v45, 0.0  ;;  %v1113_v48 = vmax.f32 %v1027_v47, 0.0  ;;  %v1035_v49 = vadd.f32 %v2559_v22, %v2615_v51 }
 0x19f   : > { %v1114_v30 = vmax.f32 %v1030_v28, 0.0  ;;  %v1116_v51 = vmax.f32 %v1038_v40, 0.0 }
 0x1a0   : > { %2167 = vmatmul.mubr.msk.f32.gmra.mrb[70].mxu1 %vm1135_vm3, %v1096_v52  ;;  %v1115_v50 = vmax.f32 %v1035_v49, 0.0  ;;  %v1043_v52 = vadd.f32 %v2559_v22, %v2623_v1 }
 0x1a1   : > { %v962_v53 = vpop.f32.mrb[80].mxu0 }
 0x1a2   : > { %v963_v56 = vadd.f32 %v2559_v22, %v962_v53  ;;  %v964_v58 = vpop.f32.mrb[81].mxu0  ;;  %v1046_v53 = vadd.f32 %v2559_v22, %v2626_v6 }
 0x1a3   : > { %v965_v59 = vpop.f32.mrb[82].mxu0  ;;  %v1119_v58 = vmax.f32 %v1051_v42, 0.0 }
 0x1a4   : > { %v1097_v60 = vmax.f32 %v963_v56, 0.0  ;;  %v966_v61 = vadd.f32 %v2559_v22, %v965_v59  ;;  %v967_v62 = vpop.f32.mrb[83].mxu0  ;;  %v1117_v56 = vmax.f32 %v1043_v52, 0.0  ;;  %v1118_v1 = vmax.f32 %v1046_v53, 0.0 }
 0x1a5   : > { %v1054_v59 = vadd.f32 %v2559_v22, %v2634_v20 }
 0x1a6   : > { %v1098_v63 = vmax.f32 %v966_v61, 0.0  ;;  %2169 = vmatprep.mubr.msk.f32.mxu1 %vm1135_vm3, %v1097_v60 }
 0x1a8   : > { %2170 = vmatmul.mubr.msk.f32.gmra.mrb[72].mxu1 %vm1135_vm3, %v1098_v63 }
 0x1a9   : > { %v970_v0 = vpop.f32.mrb[84].mxu0 }
 0x1aa   : > { %v971_v2 = vadd.f32 %v2559_v22, %v970_v0  ;;  %v972_v4 = vpop.f32.mrb[85].mxu0 }
 0x1ab   : > { %v973_v7 = vpop.f32.mrb[86].mxu0 }
 0x1ac   : > { %v1099_v8 = vmax.f32 %v971_v2, 0.0  ;;  %v974_v9 = vadd.f32 %v2559_v22, %v973_v7  ;;  %v975_v10 = vpop.f32.mrb[87].mxu0 }
 0x1ae   : > { %v1100_v11 = vmax.f32 %v974_v9, 0.0  ;;  %2172 = vmatprep.mubr.msk.f32.mxu1 %vm1135_vm3, %v1099_v8 }
 0x1b0   : > { %2173 = vmatmul.mubr.msk.f32.gmra.mrb[74].mxu1 %vm1135_vm3, %v1100_v11 }
 0x1b1   : > { %v978_v12 = vpop.f32.mrb[88].mxu0 }
 0x1b2   : > { %v979_v13 = vadd.f32 %v2559_v22, %v978_v12  ;;  %v980_v14 = vpop.f32.mrb[89].mxu0 }
 0x1b3   : > { %v981_v18 = vpop.f32.mrb[90].mxu0 }
 0x1b4   : > { %v1101_v19 = vmax.f32 %v979_v13, 0.0  ;;  %v982_v21 = vadd.f32 %v2559_v22, %v981_v18  ;;  %v983_v23 = vpop.f32.mrb[91].mxu0 }
 0x1b6   : > { %v1102_v24 = vmax.f32 %v982_v21, 0.0  ;;  %2175 = vmatprep.mubr.msk.f32.mxu1 %vm1135_vm3, %v1101_v19 }
 0x1b8   : > { %2176 = vmatmul.mubr.msk.f32.gmra.mrb[76].mxu1 %vm1135_vm3, %v1102_v24 }
 0x1b9   : > { %v986_v25 = vpop.f32.mrb[92].mxu0 }
 0x1ba   : > { %v987_v26 = vadd.f32 %v2559_v22, %v986_v25  ;;  %v988_v27 = vpop.f32.mrb[93].mxu0 }
 0x1bb   : > { %v989_v31 = vpop.f32.mrb[94].mxu0 }
 0x1bc   : > { %v1103_v32 = vmax.f32 %v987_v26, 0.0  ;;  %v990_v33 = vadd.f32 %v2559_v22, %v989_v31  ;;  %v991_v34 = vpop.f32.mrb[95].mxu0  ;;  %v1120_v22 = vmax.f32 %v1054_v59, 0.0 }
 0x1be   : > { %v1104_v36 = vmax.f32 %v990_v33, 0.0  ;;  %2178 = vmatprep.mubr.msk.f32.mxu1 %vm1135_vm3, %v1103_v32 }
 0x1c0   : > { %2179 = vmatmul.mubr.msk.f32.gmra.mrb[78].mxu1 %vm1135_vm3, %v1104_v36 }
 0x1c1   : > { %2181 = vmatprep.mubr.msk.f32.mxu1 %vm1135_vm3, %v1105_v37 }
 0x1c4   : > { %2182 = vmatmul.mubr.msk.f32.gmra.mrb[80].mxu1 %vm1135_vm3, %v1106_v55 }
 0x1c5   : > { %2184 = vmatprep.mubr.msk.f32.mxu1 %vm1135_vm3, %v1107_v41 }
 0x1c8   : > { %2185 = vmatmul.mubr.msk.f32.gmra.mrb[82].mxu1 %vm1135_vm3, %v1108_v57 }
 0x1c9   : > { %2187 = vmatprep.mubr.msk.f32.mxu1 %vm1135_vm3, %v1109_v44 }
 0x1cc   : > { %2188 = vmatmul.mubr.msk.f32.gmra.mrb[84].mxu1 %vm1135_vm3, %v1110_v5 }
 0x1cd   : > { %2190 = vmatprep.mubr.msk.f32.mxu1 %vm1135_vm3, %v1111_v46 }
 0x1d0   : > { %2191 = vmatmul.mubr.msk.f32.gmra.mrb[86].mxu1 %vm1135_vm3, %v1112_v17 }
 0x1d1   : > { %2193 = vmatprep.mubr.msk.f32.mxu1 %vm1135_vm3, %v1113_v48 }
 0x1d4   : > { %2194 = vmatmul.mubr.msk.f32.gmra.mrb[88].mxu1 %vm1135_vm3, %v1114_v30 }
 0x1d5   : > { %2196 = vmatprep.mubr.msk.f32.mxu1 %vm1135_vm3, %v1115_v50 }
 0x1d8   : > { %2197 = vmatmul.mubr.msk.f32.gmra.mrb[90].mxu1 %vm1135_vm3, %v1116_v51 }
 0x1d9   : > { %2199 = vmatprep.mubr.msk.f32.mxu1 %vm1135_vm3, %v1117_v56 }
 0x1db   : > { %v2111_v6 = vpop.f32.mrb[32].mxu1 }
 0x1dc   : > { %v1404_v16 = vadd.f32 %v2111_v6, %v2735_v54  ;;  %v1398_v60 = vpop.f32.mrb[33].mxu1  ;;  %2200 = vmatmul.mubr.msk.f32.gmra.mrb[92].mxu1 %vm1135_vm3, %v1118_v1 }
 0x1dd   : > { %v1399_v61 = vadd.f32 %v2735_v54, %v1398_v60  ;;  %2202 = vmatprep.mubr.msk.f32.mxu1 %vm1135_vm3, %v1119_v58 }
 0x1de   : > { %1719 = vst.msk [vmem:[%s2744_s19 + $0x8] sm:$0xff] %vm1717_vm4, %v1404_v16 }
 0x1df   : > { %1718 = vst.msk [vmem:[%s2744_s19] sm:$0xff] %vm1717_vm4, %v1399_v61 }
 0x1e0   : > { %2203 = vmatmul.mubr.msk.f32.gmra.mrb[94].mxu1 %vm1135_vm3, %v1120_v22 }
 0x1e3   : > { %v2114_v20 = vpop.f32.mrb[34].mxu1 }
 0x1e4   : > { %v1414_v62 = vadd.f32 %v2114_v20, %v2735_v54  ;;  %v1408_v63 = vpop.f32.mrb[35].mxu1 }
 0x1e5   : > { %v1409_v0 = vadd.f32 %v2735_v54, %v1408_v63 }
 0x1e6   : > { %1721 = vst.msk [vmem:[%s2744_s19 + $0x18] sm:$0xff] %vm1717_vm4, %v1414_v62 }
 0x1e7   : > { %1720 = vst.msk [vmem:[%s2744_s19 + $0x10] sm:$0xff] %vm1717_vm4, %v1409_v0 }
 0x1eb   : > { %v2117_v2 = vpop.f32.mrb[36].mxu1 }
 0x1ec   : > { %v1424_v4 = vadd.f32 %v2117_v2, %v2735_v54  ;;  %v1418_v7 = vpop.f32.mrb[37].mxu1 }
 0x1ed   : > { %v1419_v8 = vadd.f32 %v2735_v54, %v1418_v7 }
 0x1ee   : > { %1723 = vst.msk [vmem:[%s2744_s19 + $0x28] sm:$0xff] %vm1717_vm4, %v1424_v4 }
 0x1ef   : > { %1722 = vst.msk [vmem:[%s2744_s19 + $0x20] sm:$0xff] %vm1717_vm4, %v1419_v8 }
 0x1f3   : > { %v2120_v9 = vpop.f32.mrb[38].mxu1 }
 0x1f4   : > { %v1434_v10 = vadd.f32 %v2120_v9, %v2735_v54  ;;  %v1428_v11 = vpop.f32.mrb[39].mxu1 }
 0x1f5   : > { %v1429_v12 = vadd.f32 %v2735_v54, %v1428_v11 }
 0x1f6   : > { %1725 = vst.msk [vmem:[%s2744_s19 + $0x38] sm:$0xff] %vm1717_vm4, %v1434_v10 }
 0x1f7   : > { %1724 = vst.msk [vmem:[%s2744_s19 + $0x30] sm:$0xff] %vm1717_vm4, %v1429_v12 }
 0x1fb   : > { %v2123_v13 = vpop.f32.mrb[40].mxu1 }
 0x1fc   : > { %v1444_v14 = vadd.f32 %v2123_v13, %v2735_v54  ;;  %v1438_v18 = vpop.f32.mrb[41].mxu1 }
 0x1fd   : > { %v1439_v19 = vadd.f32 %v2735_v54, %v1438_v18 }
 0x1fe   : > { %1727 = vst.msk [vmem:[%s2744_s19 + $0x48] sm:$0xff] %vm1717_vm4, %v1444_v14 }
 0x1ff   : > { %1726 = vst.msk [vmem:[%s2744_s19 + $0x40] sm:$0xff] %vm1717_vm4, %v1439_v19 }
 0x203   : > { %v2126_v21 = vpop.f32.mrb[42].mxu1 }
 0x204   : > { %v1454_v23 = vadd.f32 %v2126_v21, %v2735_v54  ;;  %v1448_v24 = vpop.f32.mrb[43].mxu1 }
 0x205   : > { %v1449_v25 = vadd.f32 %v2735_v54, %v1448_v24 }
 0x206   : > { %1729 = vst.msk [vmem:[%s2744_s19 + $0x58] sm:$0xff] %vm1717_vm4, %v1454_v23 }
 0x207   : > { %1728 = vst.msk [vmem:[%s2744_s19 + $0x50] sm:$0xff] %vm1717_vm4, %v1449_v25 }
 0x20b   : > { %v2129_v26 = vpop.f32.mrb[44].mxu1 }
 0x20c   : > { %v1464_v27 = vadd.f32 %v2129_v26, %v2735_v54  ;;  %v1458_v29 = vpop.f32.mrb[45].mxu1 }
 0x20d   : > { %v1459_v31 = vadd.f32 %v2735_v54, %v1458_v29 }
 0x20e   : > { %1731 = vst.msk [vmem:[%s2744_s19 + $0x68] sm:$0xff] %vm1717_vm4, %v1464_v27 }
 0x20f   : > { %1730 = vst.msk [vmem:[%s2744_s19 + $0x60] sm:$0xff] %vm1717_vm4, %v1459_v31 }
 0x213   : > { %v2132_v32 = vpop.f32.mrb[46].mxu1 }
 0x214   : > { %v1474_v33 = vadd.f32 %v2132_v32, %v2735_v54  ;;  %v1468_v34 = vpop.f32.mrb[47].mxu1 }
 0x215   : > { %v1469_v35 = vadd.f32 %v2735_v54, %v1468_v34 }
 0x216   : > { %1733 = vst.msk [vmem:[%s2744_s19 + $0x78] sm:$0xff] %vm1717_vm4, %v1474_v33 }
 0x217   : > { %1732 = vst.msk [vmem:[%s2744_s19 + $0x70] sm:$0xff] %vm1717_vm4, %v1469_v35 }
 0x21b   : > { %v2135_v36 = vpop.f32.mrb[48].mxu1 }
 0x21c   : > { %v1484_v37 = vadd.f32 %v2135_v36, %v2735_v54  ;;  %v1478_v38 = vpop.f32.mrb[49].mxu1 }
 0x21d   : > { %v1479_v55 = vadd.f32 %v2735_v54, %v1478_v38 }
 0x21e   : > { %1735 = vst.msk [vmem:[%s2744_s19 + $0x88] sm:$0xff] %vm1717_vm4, %v1484_v37 }
 0x21f   : > { %1734 = vst.msk [vmem:[%s2744_s19 + $0x80] sm:$0xff] %vm1717_vm4, %v1479_v55 }
 0x223   : > { %v2138_v39 = vpop.f32.mrb[50].mxu1 }
 0x224   : > { %v1494_v41 = vadd.f32 %v2138_v39, %v2735_v54  ;;  %v1488_v43 = vpop.f32.mrb[51].mxu1 }
 0x225   : > { %v1489_v57 = vadd.f32 %v2735_v54, %v1488_v43 }
 0x226   : > { %1737 = vst.msk [vmem:[%s2744_s19 + $0x98] sm:$0xff] %vm1717_vm4, %v1494_v41 }
 0x227   : > { %1736 = vst.msk [vmem:[%s2744_s19 + $0x90] sm:$0xff] %vm1717_vm4, %v1489_v57 }
 0x22b   : > { %v2141_v3 = vpop.f32.mrb[52].mxu1 }
 0x22c   : > { %v1504_v44 = vadd.f32 %v2141_v3, %v2735_v54  ;;  %v1498_v45 = vpop.f32.mrb[53].mxu1 }
 0x22d   : > { %v1499_v5 = vadd.f32 %v2735_v54, %v1498_v45 }
 0x22e   : > { %1739 = vst.msk [vmem:[%s2744_s19 + $0xa8] sm:$0xff] %vm1717_vm4, %v1504_v44 }
 0x22f   : > { %1738 = vst.msk [vmem:[%s2744_s19 + $0xa0] sm:$0xff] %vm1717_vm4, %v1499_v5 }
 0x233   : > { %v2144_v15 = vpop.f32.mrb[54].mxu1 }
 0x234   : > { %v1514_v46 = vadd.f32 %v2144_v15, %v2735_v54  ;;  %v1508_v47 = vpop.f32.mrb[55].mxu1 }
 0x235   : > { %v1509_v17 = vadd.f32 %v2735_v54, %v1508_v47 }
 0x236   : > { %1741 = vst.msk [vmem:[%s2744_s19 + $0xb8] sm:$0xff] %vm1717_vm4, %v1514_v46 }
 0x237   : > { %1740 = vst.msk [vmem:[%s2744_s19 + $0xb0] sm:$0xff] %vm1717_vm4, %v1509_v17 }
 0x23b   : > { %v2147_v28 = vpop.f32.mrb[56].mxu1 }
 0x23c   : > { %v1524_v48 = vadd.f32 %v2147_v28, %v2735_v54  ;;  %v1518_v49 = vpop.f32.mrb[57].mxu1 }
 0x23d   : > { %v1519_v30 = vadd.f32 %v2735_v54, %v1518_v49 }
 0x23e   : > { %1743 = vst.msk [vmem:[%s2744_s19 + $0xc8] sm:$0xff] %vm1717_vm4, %v1524_v48 }
 0x23f   : > { %1742 = vst.msk [vmem:[%s2744_s19 + $0xc0] sm:$0xff] %vm1717_vm4, %v1519_v30 }
 0x243   : > { %v2150_v40 = vpop.f32.mrb[58].mxu1 }
 0x244   : > { %v1534_v50 = vadd.f32 %v2150_v40, %v2735_v54  ;;  %v1528_v52 = vpop.f32.mrb[59].mxu1 }
 0x245   : > { %v1529_v42 = vadd.f32 %v2735_v54, %v1528_v52 }
 0x246   : > { %1745 = vst.msk [vmem:[%s2744_s19 + $0xd8] sm:$0xff] %vm1717_vm4, %v1534_v50 }
 0x247   : > { %1744 = vst.msk [vmem:[%s2744_s19 + $0xd0] sm:$0xff] %vm1717_vm4, %v1529_v42 }
 0x24b   : > { %v2153_v51 = vpop.f32.mrb[60].mxu1 }
 0x24c   : > { %v1544_v53 = vadd.f32 %v2153_v51, %v2735_v54  ;;  %v1538_v56 = vpop.f32.mrb[61].mxu1 }
 0x24d   : > { %v1539_v58 = vadd.f32 %v2735_v54, %v1538_v56 }
 0x24e   : > { %1747 = vst.msk [vmem:[%s2744_s19 + $0xe8] sm:$0xff] %vm1717_vm4, %v1544_v53 }
 0x24f   : > { %1746 = vst.msk [vmem:[%s2744_s19 + $0xe0] sm:$0xff] %vm1717_vm4, %v1539_v58 }
 0x253   : > { %v2156_v1 = vpop.f32.mrb[62].mxu1 }
 0x254   : > { %v1554_v59 = vadd.f32 %v2156_v1, %v2735_v54  ;;  %v1548_v6 = vpop.f32.mrb[63].mxu1 }
 0x255   : > { %v1549_v16 = vadd.f32 %v2735_v54, %v1548_v6 }
 0x256   : > { %1749 = vst.msk [vmem:[%s2744_s19 + $0xf8] sm:$0xff] %vm1717_vm4, %v1554_v59 }
 0x257   : > { %1748 = vst.msk [vmem:[%s2744_s19 + $0xf0] sm:$0xff] %vm1717_vm4, %v1549_v16 }
 0x25b   : > { %v2159_v60 = vpop.f32.mrb[64].mxu1 }
 0x25c   : > { %v1564_v61 = vadd.f32 %v2159_v60, %v2735_v54  ;;  %v1558_v22 = vpop.f32.mrb[65].mxu1 }
 0x25d   : > { %v1559_v20 = vadd.f32 %v2735_v54, %v1558_v22 }
 0x25e   : > { %1751 = vst.msk [vmem:[%s2744_s19 + $0x108] sm:$0xff] %vm1717_vm4, %v1564_v61 }
 0x25f   : > { %1750 = vst.msk [vmem:[%s2744_s19 + $0x100] sm:$0xff] %vm1717_vm4, %v1559_v20 }
 0x263   : > { %v2162_v62 = vpop.f32.mrb[66].mxu1 }
 0x264   : > { %v1574_v63 = vadd.f32 %v2162_v62, %v2735_v54  ;;  %v1568_v0 = vpop.f32.mrb[67].mxu1 }
 0x265   : > { %v1569_v2 = vadd.f32 %v2735_v54, %v1568_v0 }
 0x266   : > { %1753 = vst.msk [vmem:[%s2744_s19 + $0x118] sm:$0xff] %vm1717_vm4, %v1574_v63 }
 0x267   : > { %1752 = vst.msk [vmem:[%s2744_s19 + $0x110] sm:$0xff] %vm1717_vm4, %v1569_v2 }
 0x26b   : > { %v2165_v4 = vpop.f32.mrb[68].mxu1 }
 0x26c   : > { %v1584_v7 = vadd.f32 %v2165_v4, %v2735_v54  ;;  %v1578_v8 = vpop.f32.mrb[69].mxu1 }
 0x26d   : > { %v1579_v9 = vadd.f32 %v2735_v54, %v1578_v8 }
 0x26e   : > { %1755 = vst.msk [vmem:[%s2744_s19 + $0x128] sm:$0xff] %vm1717_vm4, %v1584_v7 }
 0x26f   : > { %1754 = vst.msk [vmem:[%s2744_s19 + $0x120] sm:$0xff] %vm1717_vm4, %v1579_v9 }
 0x273   : > { %v2168_v10 = vpop.f32.mrb[70].mxu1 }
 0x274   : > { %v1594_v11 = vadd.f32 %v2168_v10, %v2735_v54  ;;  %v1588_v12 = vpop.f32.mrb[71].mxu1 }
 0x275   : > { %v1589_v13 = vadd.f32 %v2735_v54, %v1588_v12 }
 0x276   : > { %1757 = vst.msk [vmem:[%s2744_s19 + $0x138] sm:$0xff] %vm1717_vm4, %v1594_v11 }
 0x277   : > { %1756 = vst.msk [vmem:[%s2744_s19 + $0x130] sm:$0xff] %vm1717_vm4, %v1589_v13 }
 0x27b   : > { %v2171_v14 = vpop.f32.mrb[72].mxu1 }
 0x27c   : > { %v1604_v18 = vadd.f32 %v2171_v14, %v2735_v54  ;;  %v1598_v19 = vpop.f32.mrb[73].mxu1 }
 0x27d   : > { %v1599_v21 = vadd.f32 %v2735_v54, %v1598_v19 }
 0x27e   : > { %1759 = vst.msk [vmem:[%s2744_s19 + $0x148] sm:$0xff] %vm1717_vm4, %v1604_v18 }
 0x27f   : > { %1758 = vst.msk [vmem:[%s2744_s19 + $0x140] sm:$0xff] %vm1717_vm4, %v1599_v21 }
 0x283   : > { %v2174_v23 = vpop.f32.mrb[74].mxu1 }
 0x284   : > { %v1614_v24 = vadd.f32 %v2174_v23, %v2735_v54  ;;  %v1608_v25 = vpop.f32.mrb[75].mxu1 }
 0x285   : > { %v1609_v26 = vadd.f32 %v2735_v54, %v1608_v25 }
 0x286   : > { %1761 = vst.msk [vmem:[%s2744_s19 + $0x158] sm:$0xff] %vm1717_vm4, %v1614_v24 }
 0x287   : > { %1760 = vst.msk [vmem:[%s2744_s19 + $0x150] sm:$0xff] %vm1717_vm4, %v1609_v26 }
 0x28b   : > { %v2177_v27 = vpop.f32.mrb[76].mxu1 }
 0x28c   : > { %v1624_v29 = vadd.f32 %v2177_v27, %v2735_v54  ;;  %v1618_v31 = vpop.f32.mrb[77].mxu1 }
 0x28d   : > { %v1619_v32 = vadd.f32 %v2735_v54, %v1618_v31 }
 0x28e   : > { %1763 = vst.msk [vmem:[%s2744_s19 + $0x168] sm:$0xff] %vm1717_vm4, %v1624_v29 }
 0x28f   : > { %1762 = vst.msk [vmem:[%s2744_s19 + $0x160] sm:$0xff] %vm1717_vm4, %v1619_v32 }
 0x293   : > { %v2180_v33 = vpop.f32.mrb[78].mxu1 }
 0x294   : > { %v1634_v34 = vadd.f32 %v2180_v33, %v2735_v54  ;;  %v1628_v35 = vpop.f32.mrb[79].mxu1 }
 0x295   : > { %v1629_v36 = vadd.f32 %v2735_v54, %v1628_v35 }
 0x296   : > { %1765 = vst.msk [vmem:[%s2744_s19 + $0x178] sm:$0xff] %vm1717_vm4, %v1634_v34 }
 0x297   : > { %1764 = vst.msk [vmem:[%s2744_s19 + $0x170] sm:$0xff] %vm1717_vm4, %v1629_v36  ;;  %v2183_v37 = vpop.f32.mrb[80].mxu1 }
 0x298   : > { %v1644_v38 = vadd.f32 %v2183_v37, %v2735_v54  ;;  %v1638_v55 = vpop.f32.mrb[81].mxu1 }
 0x299   : > { %v1639_v39 = vadd.f32 %v2735_v54, %v1638_v55 }
 0x29a   : > { %1767 = vst.msk [vmem:[%s2744_s19 + $0x188] sm:$0xff] %vm1717_vm4, %v1644_v38 }
 0x29b   : > { %1766 = vst.msk [vmem:[%s2744_s19 + $0x180] sm:$0xff] %vm1717_vm4, %v1639_v39  ;;  %v2186_v41 = vpop.f32.mrb[82].mxu1 }
 0x29c   : > { %v1654_v43 = vadd.f32 %v2186_v41, %v2735_v54  ;;  %v1648_v57 = vpop.f32.mrb[83].mxu1 }
 0x29d   : > { %v1649_v3 = vadd.f32 %v2735_v54, %v1648_v57 }
 0x29e   : > { %1769 = vst.msk [vmem:[%s2744_s19 + $0x198] sm:$0xff] %vm1717_vm4, %v1654_v43 }
 0x29f   : > { %1768 = vst.msk [vmem:[%s2744_s19 + $0x190] sm:$0xff] %vm1717_vm4, %v1649_v3  ;;  %v2189_v44 = vpop.f32.mrb[84].mxu1 }
 0x2a0   : > { %v1664_v45 = vadd.f32 %v2189_v44, %v2735_v54  ;;  %v1658_v5 = vpop.f32.mrb[85].mxu1 }
 0x2a1   : > { %v1659_v15 = vadd.f32 %v2735_v54, %v1658_v5 }
 0x2a2   : > { %1771 = vst.msk [vmem:[%s2744_s19 + $0x1a8] sm:$0xff] %vm1717_vm4, %v1664_v45 }
 0x2a3   : > { %1770 = vst.msk [vmem:[%s2744_s19 + $0x1a0] sm:$0xff] %vm1717_vm4, %v1659_v15  ;;  %v2192_v46 = vpop.f32.mrb[86].mxu1 }
 0x2a4   : > { %v1674_v47 = vadd.f32 %v2192_v46, %v2735_v54  ;;  %v1668_v17 = vpop.f32.mrb[87].mxu1 }
 0x2a5   : > { %v1669_v28 = vadd.f32 %v2735_v54, %v1668_v17 }
 0x2a6   : > { %1773 = vst.msk [vmem:[%s2744_s19 + $0x1b8] sm:$0xff] %vm1717_vm4, %v1674_v47 }
 0x2a7   : > { %1772 = vst.msk [vmem:[%s2744_s19 + $0x1b0] sm:$0xff] %vm1717_vm4, %v1669_v28  ;;  %v2195_v48 = vpop.f32.mrb[88].mxu1 }
 0x2a8   : > { %v1684_v49 = vadd.f32 %v2195_v48, %v2735_v54  ;;  %v1678_v30 = vpop.f32.mrb[89].mxu1 }
 0x2a9   : > { %v1679_v40 = vadd.f32 %v2735_v54, %v1678_v30 }
 0x2aa   : > { %1775 = vst.msk [vmem:[%s2744_s19 + $0x1c8] sm:$0xff] %vm1717_vm4, %v1684_v49 }
 0x2ab   : > { %1774 = vst.msk [vmem:[%s2744_s19 + $0x1c0] sm:$0xff] %vm1717_vm4, %v1679_v40  ;;  %v2198_v50 = vpop.f32.mrb[90].mxu1 }
 0x2ac   : > { %v1694_v52 = vadd.f32 %v2198_v50, %v2735_v54  ;;  %v1688_v42 = vpop.f32.mrb[91].mxu1 }
 0x2ad   : > { %v1689_v51 = vadd.f32 %v2735_v54, %v1688_v42 }
 0x2ae   : > { %1777 = vst.msk [vmem:[%s2744_s19 + $0x1d8] sm:$0xff] %vm1717_vm4, %v1694_v52 }
 0x2af   : > { %1776 = vst.msk [vmem:[%s2744_s19 + $0x1d0] sm:$0xff] %vm1717_vm4, %v1689_v51  ;;  %v2201_v53 = vpop.f32.mrb[92].mxu1 }
 0x2b0   : > { %v1704_v56 = vadd.f32 %v2201_v53, %v2735_v54  ;;  %v1698_v58 = vpop.f32.mrb[93].mxu1 }
 0x2b1   : > { %v1699_v1 = vadd.f32 %v2735_v54, %v1698_v58 }
 0x2b2   : > { %1779 = vst.msk [vmem:[%s2744_s19 + $0x1e8] sm:$0xff] %vm1717_vm4, %v1704_v56 }
 0x2b3   : > { %1778 = vst.msk [vmem:[%s2744_s19 + $0x1e0] sm:$0xff] %vm1717_vm4, %v1699_v1  ;;  %v2204_v59 = vpop.f32.mrb[94].mxu1 }
 0x2b4   : > { %v1714_v6 = vadd.f32 %v2204_v59, %v2735_v54  ;;  %v1708_v16 = vpop.f32.mrb[95].mxu1 }
 0x2b5   : > { %v1709_v60 = vadd.f32 %v2735_v54, %v1708_v16 }
 0x2b6   : > { %1781 = vst.msk [vmem:[%s2744_s19 + $0x1f8] sm:$0xff] %vm1717_vm4, %v1714_v6 }
 0x2b7   : > { %1780 = vst.msk [vmem:[%s2744_s19 + $0x1f0] sm:$0xff] %vm1717_vm4, %v1709_v60 }
 0x2b8 PF: > { %s15_s18 = sadd.s32 1, %s2358_s18  }
 0x2b9   : > { %p12_p4 = scmp.ge.s32.totalorder %s15_s18, 6  }
 0x2bb   :  { %14 = sbr.rel (!%p12_p4) target bundleno = 1 (0x1), region = 70 }

</bundles_post_ra>
